<compile_context>
chip_gen: v7x
topology: tpu7x:2x2x1
jax: 0.10.0
libtpu: 0.0.40
codegen_flags: <defaults>
</compile_context>

<pallas_src>
import functools

import jax
import jax.numpy as jnp
from jax import lax
from jax.experimental import pallas as pl
from jax.experimental.pallas import tpu as pltpu


def _round_up(a, b):
    return ((a + b - 1) // b) * b


def _frn_kernel(x_ref, p_ref, o_ref, *, eps, inv_hw, tr, hw, mask_lanes):
    # x_ref block: (tr, HW). Rows = flattened (n, c); lanes = spatial.
    # p_ref: resident (rows_pad, 3) packed [gamma, beta, tau] per row.
    x = x_ref[...]
    xf = x.astype(jnp.float32)  # identity for f32 inputs

    if mask_lanes:
        # HW is not a multiple of 128: make sure the physical padding lanes of
        # the VMEM tile cannot contribute to the per-row sum of squares.
        lane = lax.broadcasted_iota(jnp.int32, xf.shape, 1)
        x2 = jnp.where(lane < hw, xf * xf, 0.0)
    else:
        x2 = xf * xf

    # Divide by the TRUE H*W (padding lanes contribute nothing).
    nu2 = jnp.sum(x2, axis=-1, keepdims=True) * inv_hw                # (tr, 1)

    # Per-block row slice of the resident packed params.
    r0 = pl.multiple_of(pl.program_id(0) * tr, tr)
    p = p_ref[pl.ds(r0, tr), :].astype(jnp.float32)                   # (tr, 3)
    gamma = p[:, 0:1]
    beta = p[:, 1:2]
    tau = p[:, 2:3]

    scale = gamma * lax.rsqrt(nu2 + eps)      # gamma folded into the scale
    z = jnp.maximum(xf * scale + beta, tau)
    o_ref[...] = z.astype(o_ref.dtype)


def filter_response_norm(x, gamma, beta, tau, eps=1e-6):
    """x: (N, C, H, W); gamma/beta/tau: (1, C, 1, 1). Returns (N, C, H, W)."""
    N, C, H, W = x.shape
    HW = H * W
    rows = N * C
    itemsize = jnp.dtype(x.dtype).itemsize

    # Sublane alignment matching the packed-dtype tiling: f32 -> 8, bf16 -> 16,
    # int8/fp8 -> 32 rows per vreg.
    row_align = 8 * max(1, 4 // itemsize)

    hw_lanes = _round_up(HW, 128)             # physical lane footprint in VMEM
    bytes_per_row = hw_lanes * itemsize

    # ~2 MiB per pipelined buffer ...
    tr = max(row_align, ((2 << 20) // bytes_per_row) // row_align * row_align)
    # ... but keep at least ~8 grid steps so the pipeline double-buffers and the
    # single 'parallel' axis shards across both v7x TensorCores.
    tr = min(tr, max(row_align, _round_up(pl.cdiv(rows, 8), row_align)))
    num_blocks = pl.cdiv(rows, tr)
    rows_pad = num_blocks * tr

    # x is passed UNPADDED; the ragged last row-block and (if HW % 128 != 0)
    # the padded lanes are handled inside the kernel. No extra HBM pass.
    x2 = x.reshape(rows, HW)

    # Per-row params in (n*C + c) order, packed into one tiny resident array.
    # Zero padding rows is benign: padded rows compute on stale VMEM data but
    # their outputs are never written back to HBM (partial output block).
    g = jnp.tile(gamma.reshape(C), N)
    b = jnp.tile(beta.reshape(C), N)
    t = jnp.tile(tau.reshape(C), N)
    params = jnp.stack([g, b, t], axis=-1).astype(jnp.float32)        # (rows, 3)
    if rows_pad != rows:
        params = jnp.pad(params, ((0, rows_pad - rows), (0, 0)))      # few bytes

    kernel = functools.partial(
        _frn_kernel, eps=float(eps), inv_hw=1.0 / HW, tr=tr, hw=HW,
        mask_lanes=(HW % 128 != 0))

    # Scoped VMEM budget: 2x(in) + 2x(out) pipelined buffers + resident params.
    blk_bytes = tr * hw_lanes * itemsize
    params_bytes = rows_pad * 128 * 4
    vmem_limit = int(min(max(4 * blk_bytes + 2 * params_bytes + (4 << 20),
                             16 << 20), 64 << 20))
    # TODO(synk): for very large H*W (min-row block 8*hw_lanes*4B per buffer
    # beyond the scoped limit) add a lane-tiled two-pass path (inner
    # 'arbitrary' axis + (tr,1) nu2 accumulator) instead of one spatial block.

    out = pl.pallas_call(
        kernel,
        out_shape=jax.ShapeDtypeStruct((rows, HW), x.dtype),
        grid_spec=pltpu.PrefetchScalarGridSpec(
            num_scalar_prefetch=0,
            grid=(num_blocks,),
            in_specs=[
                pl.BlockSpec((tr, HW), lambda r: (r, 0)),        # x row blocks
                pl.BlockSpec((rows_pad, 3), lambda r: (0, 0)),   # resident params
            ],
            out_specs=pl.BlockSpec((tr, HW), lambda r: (r, 0)),
        ),
        compiler_params=pltpu.CompilerParams(
            dimension_semantics=("parallel",),
            vmem_limit_bytes=vmem_limit,
        ),
    )(x2, params)

    return out.reshape(N, C, H, W)


def filter_response_norm_ref(x, gamma, beta, tau, eps=1e-6):
    """Pure-JAX reference matching the PyTorch forward exactly."""
    nu2 = jnp.mean(jnp.square(x), axis=(2, 3), keepdims=True)
    xn = x / jnp.sqrt(nu2 + eps)
    y = gamma * xn + beta
    return jnp.maximum(y, tau)


if __name__ == "__main__":
    key = jax.random.PRNGKey(0)
    N, C, H, W = 2, 4, 16, 16

    x = jax.random.normal(key, (N, C, H, W), dtype=jnp.float32)

    # Deterministic parameter init, matching the PyTorch __init__:
    #   tau = zeros, beta = zeros, gamma = ones, each of shape (1, C, 1, 1)
    tau = jnp.zeros((1, C, 1, 1), dtype=jnp.float32)
    beta = jnp.zeros((1, C, 1, 1), dtype=jnp.float32)
    gamma = jnp.ones((1, C, 1, 1), dtype=jnp.float32)

    out = filter_response_norm(x, gamma, beta, tau)
    out = jax.block_until_ready(out)

    ref = filter_response_norm_ref(x, gamma, beta, tau)
    assert out.shape == (N, C, H, W)
    assert jnp.allclose(out, ref, atol=1e-5, rtol=1e-5), "mismatch vs reference"

    print("KERNEL_OK")
</pallas_src>

<mosaic_0001>
module attributes {stable_mosaic.version = 11 : i64} {
  func.func @_frn_kernel(%arg0: i32, %arg1: memref<8x256xf32, #tpu.memory_space<vmem>>, %arg2: memref<8x3xf32, #tpu.memory_space<vmem>>, %arg3: memref<8x256xf32, #tpu.memory_space<vmem>>) attributes {dimension_semantics = [#tpu.dimension_semantics<parallel>], iteration_bounds = array<i64: 1>, scalar_prefetch = 0 : i64, scratch_operands = 0 : i64, tpu.core_type = #tpu.core_type<tc>, window_params = [{transform_indices = @transform_0, window_bounds = array<i64: 8, 256>}, {pipeline_mode = #tpu.pipeline_mode<synchronous>, transform_indices = @transform_1, window_bounds = array<i64: 8, 3>}, {transform_indices = @transform_2, window_bounds = array<i64: 8, 256>}]} {
    %c0 = arith.constant 0 : index
    %c0_0 = arith.constant 0 : index
    %0 = vector.load %arg1[%c0, %c0_0] : memref<8x256xf32, #tpu.memory_space<vmem>>, vector<8x256xf32>
    %1 = arith.mulf %0, %0 : vector<8x256xf32>
    %cst = arith.constant dense<0.000000e+00> : vector<8xf32>
    %2 = vector.multi_reduction <add>, %1, %cst [1] : vector<8x256xf32> to vector<8xf32>
    %3 = vector.shape_cast %2 : vector<8xf32> to vector<8x1xf32>
    %cst_1 = arith.constant 3.906250e-03 : f32
    %4 = vector.broadcast %cst_1 : f32 to vector<8x1xf32>
    %5 = arith.mulf %3, %4 : vector<8x1xf32>
    %c8_i32 = arith.constant 8 : i32
    %6 = arith.muli %arg0, %c8_i32 : i32
    %7 = tpu.assume_multiple %6, 8 : i32
    %8 = arith.index_cast %7 : i32 to index
    %c0_2 = arith.constant 0 : index
    %9 = vector.load %arg2[%8, %c0_2] : memref<8x3xf32, #tpu.memory_space<vmem>>, vector<8x3xf32>
    %10 = vector.extract_strided_slice %9 {offsets = [0, 0], sizes = [8, 1], strides = [1, 1]} : vector<8x3xf32> to vector<8x1xf32>
    %11 = vector.extract_strided_slice %9 {offsets = [0, 1], sizes = [8, 1], strides = [1, 1]} : vector<8x3xf32> to vector<8x1xf32>
    %12 = vector.extract_strided_slice %9 {offsets = [0, 2], sizes = [8, 1], strides = [1, 1]} : vector<8x3xf32> to vector<8x1xf32>
    %cst_3 = arith.constant 9.99999997E-7 : f32
    %13 = vector.broadcast %cst_3 : f32 to vector<8x1xf32>
    %14 = arith.addf %5, %13 : vector<8x1xf32>
    %15 = math.rsqrt %14 : vector<8x1xf32>
    %16 = arith.mulf %10, %15 : vector<8x1xf32>
    %17 = vector.broadcast %16 : vector<8x1xf32> to vector<8x256xf32>
    %18 = arith.mulf %0, %17 : vector<8x256xf32>
    %19 = vector.broadcast %11 : vector<8x1xf32> to vector<8x256xf32>
    %20 = arith.addf %18, %19 : vector<8x256xf32>
    %21 = vector.broadcast %12 : vector<8x1xf32> to vector<8x256xf32>
    %22 = arith.maximumf %20, %21 : vector<8x256xf32>
    %c0_4 = arith.constant 0 : index
    %c0_5 = arith.constant 0 : index
    %23 = vector.load %arg3[%c0_4, %c0_5] : memref<8x256xf32, #tpu.memory_space<vmem>>, vector<8x256xf32>
    tpu.vector_store %arg3[%c0_4, %c0_5], %22 {strides = array<i32>} : memref<8x256xf32, #tpu.memory_space<vmem>>, vector<8x256xf32>,
    return
  }
  func.func @transform_0(%arg0: i32) -> (i32, i32) {
    %c0_i32 = arith.constant 0 : i32
    %c0_i32_0 = arith.constant 0 : i32
    return %arg0, %c0_i32 : i32, i32
  }
  func.func @transform_1(%arg0: i32) -> (i32, i32) {
    %c0_i32 = arith.constant 0 : i32
    %c0_i32_0 = arith.constant 0 : i32
    %c0_i32_1 = arith.constant 0 : i32
    return %c0_i32, %c0_i32_0 : i32, i32
  }
  func.func @transform_2(%arg0: i32) -> (i32, i32) {
    %c0_i32 = arith.constant 0 : i32
    %c0_i32_0 = arith.constant 0 : i32
    return %arg0, %c0_i32 : i32, i32
  }
}

</mosaic_0001>

<bundles_post_ra>
// kernel: tpu_custom_call.1
= control target key start
LH: loop header
LB: loop body
LE: loop exit
PB: predicated region body
PF: predicated region fallthrough
CT: control target
= control target key end

     0   :  { %7 = vsyncpa [#allocation3], 0  ;;  %s181_s0 = inlined_call_operand.hbm [shape: f32[8,256], index: 0, kind: input, shape index: {}]   ;;  %s182_s1 = inlined_call_operand.vmem [shape: f32[8,3], index: 1, kind: input, shape index: {}]   ;;  %s183_s2 = inlined_call_operand.hbm [shape: f32[8,256], index: 2, kind: output, shape index: {}]  }
   0x1   :  { %8 = vsyncpa [#allocation4], 0  ;;  %s134_s9 = smov [#allocation2]   ;;  %s86_s13 = scalar_lea.hbm %s181_s0, 256 }
   0x2   :  { %s15_s10 = sshll.u32 %s134_s9, 4  ;;  %p87_p0 = scmp.ne.s32.totalorder %s181_s0, %s86_s13  ;;  %s16_s10 = int_to_ptr.vmem [resolvable:$true] %s15_s10 }
   0x3   :  { %p90_p1 = scmp.lt.u32.totalorder %s86_s13, %s181_s0 }
   0x5   :  { %p92_p2 = pnand %p90_p1, %p87_p0 }
   0x7   :  { %95 = shalt.err (!%p92_p2)
}
   0x8   :  { %s96_s18 = scalar_lea.vmem %s16_s10, 256  ;;  %p101_p4 = scmp.lt.s32.totalorder %s16_s10, %s16_s10 }
   0x9   :  { %p97_p3 = scmp.ne.s32.totalorder %s16_s10, %s96_s18  ;;  %p102_p5 = scmp.lt.s32.totalorder %s96_s18, %s96_s18 }
   0xb   :  { %p103_p6 = por %p102_p5, %p101_p4 }
   0xd   :  { %p104_p7 = pnand %p103_p6, %p97_p3 }
   0xf   :  { %107 = shalt.err (!%p104_p7)
}
  0x10   :  { %18 = dma.hbm_to_vmem [thread:$0]  %s181_s0, 256, %s16_s10, [#allocation3]  }
  0x11   :  { %130 = dma.done.wait [#allocation3], 256  }
  0x12   :  { %131 = vsyncadd [#allocation3], 4294967040  ;;  %v24_v0 = vld [vmem:[#allocation2] sm:$0xff]  ;;  %v25_v1 = vld [vmem:[#allocation2 + $0x8] sm:$0xff]  ;;  %v135_v6 = vmov 1   ;;  %v136_v7 = vmov 0  }
  0x13   :  { %v26_v2 = vmul.f32 %v24_v0, %v24_v0  ;;  %v27_v3 = vmul.f32 %v25_v1, %v25_v1  ;;  %v34_v5 = vld [vmem:[%s182_s1] sm:$0xff]  ;;  %81 = vset.pattern.permute.xlu1 %v135_v6  ;;  %80 = vset.pattern.permute.xlu0 %v136_v7  ;;  %v137_v8 = vmov 2   ;;  %s138_s0 = smov [#allocation5]  }
  0x14   :  { %47 = vperm.xlu1 %81, %v34_v5   ;;  %s66_s1 = sshll.u32 %s138_s0, 4  ;;  %s67_s1 = int_to_ptr.vmem [resolvable:$true] %s66_s1 }
  0x15   :  { %v28_v4 = vadd.f32 %v27_v3, %v26_v2  ;;  %s108_s23 = scalar_lea.vmem %s67_s1, 256  ;;  %p113_p9 = scmp.lt.s32.totalorder %s67_s1, %s67_s1 }
  0x16   :  { %p109_p8 = scmp.ne.s32.totalorder %s67_s1, %s108_s23  ;;  %p114_p10 = scmp.lt.s32.totalorder %s108_s23, %s108_s23 }
  0x17   :  { %29 = vadd.xlane.f32.xlu0 %v28_v4 }
  0x18   :  { %82 = vset.pattern.permute.xlu1 %v137_v8  ;;  %p115_p11 = por %p114_p10, %p113_p9 }
  0x19   :  { %53 = vperm.xlu1 %82, %v34_v5  }
  0x1a   :  { %p116_p12 = pnand %p115_p11, %p109_p8 }
  0x93   :  { %v48_v14 = vpop.permute.xlu1 %47 }
  0x98   :  { %v54_v18 = vpop.permute.xlu1 %53 }
  0xa4   :  { %v30_v9 = vpop.xlane.xlu0 %29 }
  0xa5   :  { %v31_v10 = vmul.f32 0.00390625, %v30_v9 }
  0xa7   :  { %v35_v11 = vadd.f32 1e-06, %v31_v10 }
  0xa9   :  { %84 = vrsqrt.f32 %v35_v11 }
  0xb3   :  { %v85_v12 = vpop.eup %84 }
  0xb4   :  { %v37_v13 = vmul.f32 %v85_v12, %v34_v5 }
  0xb6   :  { %40 = vperm.xlu0 %80, %v37_v13  }
  0xba   :  { %83 = vset.pattern.permute.xlu0 %v137_v8 }
 0x135   :  { %v41_v15 = vpop.permute.xlu0 %40 }
 0x136   :  { %v43_v16 = vmul.f32 %v41_v15, %v24_v0  ;;  %v44_v17 = vmul.f32 %v41_v15, %v25_v1 }
 0x138   :  { %v50_v19 = vadd.f32 %v48_v14, %v43_v16  ;;  %v51_v20 = vadd.f32 %v48_v14, %v44_v17 }
 0x13a   :  { %v56_v21 = vmax.f32 %v50_v19, %v54_v18  ;;  %v57_v22 = vmax.f32 %v51_v20, %v54_v18 }
 0x13c   :  { %58 = vst [vmem:[#allocation5] sm:$0xff] %v56_v21  ;;  %59 = vst [vmem:[#allocation5 + $0x8] sm:$0xff] %v57_v22 }
 0x13d   :  { %119 = shalt.err (!%p116_p12)
}
 0x13e   :  { %s120_s26 = scalar_lea.hbm %s183_s2, 256 }
 0x13f   :  { %p121_p13 = scmp.ne.s32.totalorder %s183_s2, %s120_s26  ;;  %p124_p0 = scmp.lt.u32.totalorder %s120_s26, %s183_s2 }
 0x141   :  { %p126_p1 = pnand %p124_p0, %p121_p13 }
 0x143   :  { %129 = shalt.err (!%p126_p1)
}
 0x144   :  { %69 = dma.vmem_to_hbm [thread:$0]  %s67_s1, 256, %s183_s2, [#allocation4]  }
 0x145   :  { %132 = dma.done.wait [#allocation4], 256  }
 0x146   :  { %133 = vsyncadd [#allocation4], 4294967040 }
 0x147   :  { %73 = vsyncpa [#allocation3], 1 }
 0x148   :  { %74 = vsyncpa [#allocation4], 1 }

</bundles_post_ra>
